<compile_context>
chip_gen: v7x
topology: tpu7x:2x2x1
jax: 0.10.0
libtpu: 0.0.40
codegen_flags: <defaults>
</compile_context>

<pallas_src>
import functools
import math

import jax
import jax.numpy as jnp
from jax.experimental import pallas as pl
from jax.experimental.pallas import tpu as pltpu

_LANE = 128
_MAX_TILE_T = 2048  # lanes per block on the trailing axis (multiple of 128)


# ----------------------------------------------------------------------------
# Generation-aware VMEM budget
# ----------------------------------------------------------------------------
@functools.lru_cache(maxsize=None)
def _vmem_budgets():
    """Returns (input-block budget bytes, vmem_limit_bytes)."""
    try:
        cap = pltpu.get_tpu_info().vmem_capacity_bytes
    except Exception:
        cap = 64 * 1024 * 1024  # conservative (v7x-sized) fallback
    if cap >= 96 * 1024 * 1024:  # v5e / v6e: 128 MiB physical VMEM
        return 28 * 1024 * 1024, 64 * 1024 * 1024
    return 12 * 1024 * 1024, 32 * 1024 * 1024  # v7x: 64 MiB physical


def _sublane(itemsize):
    # Minimum sublane granule per dtype: f32 -> 8, bf16 -> 16, int8/fp8 -> 32.
    return max(8, 32 // itemsize)


def _round_up(x, m):
    return ((x + m - 1) // m) * m


def _round_down(x, m):
    return (x // m) * m


# ----------------------------------------------------------------------------
# Kernels: reduce the LAST axis of a 2-D (L, R) view  ->  (L, 1)
# ----------------------------------------------------------------------------
def _mean_last_single_kernel(x_ref, o_ref, *, inv_r):
    x = x_ref[...].astype(jnp.float32)                       # (block_l, R)
    o_ref[...] = (jnp.sum(x, axis=-1, keepdims=True) * inv_r).astype(o_ref.dtype)


def _mean_last_acc_kernel(x_ref, o_ref, acc_ref, *, inv_r, r_total, block_r,
                          needs_mask):
    r = pl.program_id(1)
    last = pl.num_programs(1) - 1

    @pl.when(r == 0)
    def _init():
        acc_ref[...] = jnp.zeros_like(acc_ref)

    def _accumulate(mask):
        x = x_ref[...].astype(jnp.float32)                   # (block_l, block_r)
        if mask:
            lane = jax.lax.broadcasted_iota(jnp.int32, x.shape, 1)
            x = jnp.where(lane < (r_total - r * block_r), x, 0.0)
        acc_ref[...] += jnp.sum(x, axis=-1, keepdims=True)    # (block_l, 1)

    if needs_mask:
        @pl.when(r < last)
        def _body():
            _accumulate(False)

        @pl.when(r == last)
        def _tail():
            _accumulate(True)
    else:
        _accumulate(False)

    @pl.when(r == last)
    def _store():
        o_ref[...] = (acc_ref[...] * inv_r).astype(o_ref.dtype)


def _plan_last(L, R, itemsize, budget):
    sub = _sublane(itemsize)
    in_row = _round_up(R, _LANE) * itemsize      # padded bytes / L-row, block_r == R
    out_row = _LANE * itemsize                   # padded bytes / output row
    per_row = 2 * (in_row + out_row)             # double-buffered in + out
    if sub * per_row <= budget:
        block_r = R                               # whole reduction on the lane axis
        block_l = min(L, max(sub, _round_down(budget // per_row, sub)))
        return True, block_l, block_r
    # R alone exceeds the budget: split R (lane axis, multiples of 128).
    block_l = L if L < sub else sub
    max_r = budget // (2 * _round_up(block_l, sub) * itemsize)
    block_r = max(_LANE, _round_down(max_r, _LANE))
    return False, block_l, block_r


def _mean_last(x2d, budget, vmem_limit):
    """Mean over axis 1 of (L, R) -> (L, 1); R is the contiguous axis."""
    L, R = x2d.shape
    itemsize = jnp.dtype(x2d.dtype).itemsize
    sub = _sublane(itemsize)
    fast, block_l, block_r = _plan_last(L, R, itemsize, budget)

    # v7x: make sure >= 2 parallel slices exist when there is real work,
    # so both TensorCores are occupied.
    if fast and block_l >= L and L > sub and L * R * itemsize >= (2 << 20):
        half = _round_up((L + 1) // 2, sub)
        if half < L:
            block_l = half

    cost = pl.CostEstimate(flops=L * R, transcendentals=0,
                           bytes_accessed=(L * R + L) * itemsize)
    out_shape = jax.ShapeDtypeStruct((L, 1), x2d.dtype)

    if fast:
        kernel = functools.partial(_mean_last_single_kernel, inv_r=1.0 / R)
        return pl.pallas_call(
            kernel,
            out_shape=out_shape,
            grid_spec=pltpu.PrefetchScalarGridSpec(
                num_scalar_prefetch=0,
                grid=(pl.cdiv(L, block_l),),
                in_specs=[pl.BlockSpec((block_l, R), lambda l: (l, 0))],
                out_specs=pl.BlockSpec((block_l, 1), lambda l: (l, 0)),
            ),
            compiler_params=pltpu.CompilerParams(
                dimension_semantics=("parallel",),
                vmem_limit_bytes=vmem_limit),
            cost_estimate=cost,
        )(x2d)

    needs_mask = (R % block_r) != 0
    kernel = functools.partial(_mean_last_acc_kernel, inv_r=1.0 / R,
                               r_total=R, block_r=block_r, needs_mask=needs_mask)
    return pl.pallas_call(
        kernel,
        out_shape=out_shape,
        grid_spec=pltpu.PrefetchScalarGridSpec(
            num_scalar_prefetch=0,
            grid=(pl.cdiv(L, block_l), pl.cdiv(R, block_r)),
            in_specs=[pl.BlockSpec((block_l, block_r), lambda l, r: (l, r))],
            out_specs=pl.BlockSpec((block_l, 1), lambda l, r: (l, 0)),
            scratch_shapes=[pltpu.VMEM((block_l, 1), jnp.float32)],
        ),
        compiler_params=pltpu.CompilerParams(
            dimension_semantics=("parallel", "arbitrary"),
            vmem_limit_bytes=vmem_limit),
        cost_estimate=cost,
    )(x2d)


# ----------------------------------------------------------------------------
# Kernels: reduce the MIDDLE axis of a 3-D (L, R, T) view  ->  (L, 1, T)
# ----------------------------------------------------------------------------
def _mean_lrt_single_kernel(x_ref, o_ref, *, inv_r):
    x = x_ref[...].astype(jnp.float32)                       # (block_l, R, tile_t)
    o_ref[...] = (jnp.sum(x, axis=1, keepdims=True) * inv_r).astype(o_ref.dtype)


def _mean_lrt_acc_kernel(x_ref, o_ref, acc_ref, *, inv_r, r_total, block_r,
                         needs_mask):
    r = pl.program_id(2)
    last = pl.num_programs(2) - 1

    @pl.when(r == 0)
    def _init():
        acc_ref[...] = jnp.zeros_like(acc_ref)

    def _accumulate(mask):
        x = x_ref[...].astype(jnp.float32)                   # (block_r, tile_t)
        if mask:
            row = jax.lax.broadcasted_iota(jnp.int32, x.shape, 0)
            x = jnp.where(row < (r_total - r * block_r), x, 0.0)
        acc_ref[...] += jnp.sum(x, axis=0, keepdims=True)     # (1, tile_t)

    if needs_mask:
        @pl.when(r < last)
        def _body():
            _accumulate(False)

        @pl.when(r == last)
        def _tail():
            _accumulate(True)
    else:
        _accumulate(False)

    @pl.when(r == last)
    def _store():
        o_ref[...] = (acc_ref[...] * inv_r).astype(o_ref.dtype)


def _plan_lrt(L, R, T, itemsize, budget):
    sub = _sublane(itemsize)
    tile_t = T if T <= _MAX_TILE_T else _MAX_TILE_T
    lane_pad = _round_up(tile_t, _LANE)
    max_r = max(sub, budget // (2 * lane_pad * itemsize))
    if R <= max_r:
        # Whole reduction in one block: batch L within the (padded) budget.
        in_slab = _round_up(R, sub) * lane_pad * itemsize
        out_slab = sub * lane_pad * itemsize
        per_l = 2 * (in_slab + out_slab)
        block_l = int(max(1, min(L, budget // max(per_l, 1), 1024)))
        return True, block_l, R, tile_t
    # Accumulator path: block_l = 1, block_r limited by the budget.
    block_r = max(sub, _round_down(max_r, sub))
    return False, 1, block_r, tile_t


def _mean_lrt(x3d, budget, vmem_limit):
    """Mean over axis 1 of (L, R, T) -> (L, 1, T), single HBM pass."""
    L, R, T = x3d.shape
    itemsize = jnp.dtype(x3d.dtype).itemsize
    fast, block_l, block_r, tile_t = _plan_lrt(L, R, T, itemsize, budget)

    # v7x: guarantee >= 2 parallel slices when there is enough work for 2 TCs.
    if (pl.cdiv(L, block_l) * pl.cdiv(T, tile_t) == 1
            and L * R * T * itemsize >= (2 << 20)):
        if L >= 2:
            block_l = (L + 1) // 2
        elif T >= 2 * _LANE:
            tile_t = _round_up((T + 1) // 2, _LANE)

    cost = pl.CostEstimate(flops=L * R * T, transcendentals=0,
                           bytes_accessed=(L * R * T + L * T) * itemsize)
    out_shape = jax.ShapeDtypeStruct((L, 1, T), x3d.dtype)

    if fast:
        kernel = functools.partial(_mean_lrt_single_kernel, inv_r=1.0 / R)
        return pl.pallas_call(
            kernel,
            out_shape=out_shape,
            grid_spec=pltpu.PrefetchScalarGridSpec(
                num_scalar_prefetch=0,
                grid=(pl.cdiv(L, block_l), pl.cdiv(T, tile_t)),
                in_specs=[pl.BlockSpec((block_l, R, tile_t),
                                       lambda l, t: (l, 0, t))],
                out_specs=pl.BlockSpec((block_l, 1, tile_t),
                                       lambda l, t: (l, 0, t)),
            ),
            compiler_params=pltpu.CompilerParams(
                dimension_semantics=("parallel", "parallel"),
                vmem_limit_bytes=vmem_limit),
            cost_estimate=cost,
        )(x3d)

    needs_mask = (R % block_r) != 0
    kernel = functools.partial(_mean_lrt_acc_kernel, inv_r=1.0 / R,
                               r_total=R, block_r=block_r, needs_mask=needs_mask)
    return pl.pallas_call(
        kernel,
        out_shape=out_shape,
        grid_spec=pltpu.PrefetchScalarGridSpec(
            num_scalar_prefetch=0,
            grid=(L, pl.cdiv(T, tile_t), pl.cdiv(R, block_r)),
            in_specs=[pl.BlockSpec((None, block_r, tile_t),
                                   lambda l, t, r: (l, r, t))],
            out_specs=pl.BlockSpec((None, 1, tile_t),
                                   lambda l, t, r: (l, 0, t)),
            scratch_shapes=[pltpu.VMEM((1, tile_t), jnp.float32)],
        ),
        compiler_params=pltpu.CompilerParams(
            dimension_semantics=("parallel", "parallel", "arbitrary"),
            vmem_limit_bytes=vmem_limit),
        cost_estimate=cost,
    )(x3d)


# ----------------------------------------------------------------------------
# Public wrapper — equivalent of torch.Tensor.mean(dim=dim, keepdim=True)
# ----------------------------------------------------------------------------
def mean_keepdim(x, dim):
    ndim = x.ndim
    dim = dim % ndim
    out_shape = x.shape[:dim] + (1,) + x.shape[dim + 1:]
    L = math.prod(x.shape[:dim])
    R = x.shape[dim]
    T = math.prod(x.shape[dim + 1:])

    if R == 1:                       # mean over a size-1 axis is the identity
        return x.reshape(out_shape)

    budget, vmem_limit = _vmem_budgets()
    if T == 1:
        # Reducing the last (contiguous) axis: lane-dense (L, R) layout.
        out = _mean_last(x.reshape(L, R), budget, vmem_limit)       # (L, 1)
    else:
        out = _mean_lrt(x.reshape(L, R, T), budget, vmem_limit)     # (L, 1, T)
    return out.reshape(out_shape)


class Mean:
    """Pallas equivalent of the PyTorch `Mean` module."""

    def __init__(self, dim):
        self.dim = dim

    def __call__(self, x):
        return mean_keepdim(x, self.dim)


if __name__ == "__main__":
    key = jax.random.PRNGKey(0)
    k0, k1, k2 = jax.random.split(key, 3)

    # NCHW-style input; the module reduces one axis with keepdim=True.
    x = jax.random.normal(k0, (2, 4, 16, 16), dtype=jnp.float32)

    # dim=1: general (L, R, T) path, single-R-block fast kernel, L batched.
    y = jax.block_until_ready(Mean(1)(x))
    y_ref = jnp.mean(x, axis=1, keepdims=True)
    assert y.shape == y_ref.shape == (2, 1, 16, 16), y.shape
    assert jnp.allclose(y, y_ref, atol=1e-6, rtol=1e-6)

    # dim=2: same kernel family, different axis split.
    y2 = jax.block_until_ready(mean_keepdim(x, 2))
    y2_ref = jnp.mean(x, axis=2, keepdims=True)
    assert y2.shape == y2_ref.shape == (2, 4, 1, 16), y2.shape
    assert jnp.allclose(y2, y2_ref, atol=1e-6, rtol=1e-6)

    # dim=-1: last-axis (T == 1) lane-dense path.
    y3 = jax.block_until_ready(mean_keepdim(x, -1))
    y3_ref = jnp.mean(x, axis=3, keepdims=True)
    assert y3.shape == y3_ref.shape == (2, 4, 16, 1), y3.shape
    assert jnp.allclose(y3, y3_ref, atol=1e-6, rtol=1e-6)

    # Compile-test the multi-R-block accumulator kernels (with the masked tail)
    # by forcing them with an artificially tiny block budget.
    xb = jax.random.normal(k1, (4, 40, 96), dtype=jnp.float32)
    yb = jax.block_until_ready(_mean_lrt(xb, budget=16 * 1024,
                                         vmem_limit=32 * 1024 * 1024))
    assert jnp.allclose(yb, jnp.mean(xb, axis=1, keepdims=True),
                        atol=1e-5, rtol=1e-5)

    xc = jax.random.normal(k2, (8, 300), dtype=jnp.float32)
    yc = jax.block_until_ready(_mean_last(xc, budget=8 * 1024,
                                          vmem_limit=32 * 1024 * 1024))
    assert jnp.allclose(yc, jnp.mean(xc, axis=1, keepdims=True),
                        atol=1e-5, rtol=1e-5)

    print("KERNEL_OK")
</pallas_src>

<mosaic_0001>
module attributes {stable_mosaic.version = 11 : i64} {
  func.func @_mean_lrt_single_kernel(%arg0: i32, %arg1: i32, %arg2: memref<2x4x256xf32, #tpu.memory_space<vmem>>, %arg3: memref<2x1x256xf32, #tpu.memory_space<vmem>>) attributes {dimension_semantics = [#tpu.dimension_semantics<parallel>, #tpu.dimension_semantics<parallel>], iteration_bounds = array<i64: 1, 1>, scalar_prefetch = 0 : i64, scratch_operands = 0 : i64, tpu.core_type = #tpu.core_type<tc>, window_params = [{transform_indices = @transform_0, window_bounds = array<i64: 2, 4, 256>}, {transform_indices = @transform_1, window_bounds = array<i64: 2, 1, 256>}]} {
    %c0 = arith.constant 0 : index
    %c0_0 = arith.constant 0 : index
    %c0_1 = arith.constant 0 : index
    %0 = vector.load %arg2[%c0, %c0_0, %c0_1] : memref<2x4x256xf32, #tpu.memory_space<vmem>>, vector<2x4x256xf32>
    %cst = arith.constant dense<0.000000e+00> : vector<2x256xf32>
    %1 = vector.multi_reduction <add>, %0, %cst [1] : vector<2x4x256xf32> to vector<2x256xf32>
    %2 = vector.shape_cast %1 : vector<2x256xf32> to vector<2x1x256xf32>
    %cst_2 = arith.constant 2.500000e-01 : f32
    %3 = vector.broadcast %cst_2 : f32 to vector<2x1x256xf32>
    %4 = arith.mulf %2, %3 : vector<2x1x256xf32>
    %c0_3 = arith.constant 0 : index
    %c0_4 = arith.constant 0 : index
    %c0_5 = arith.constant 0 : index
    %5 = vector.load %arg3[%c0_3, %c0_4, %c0_5] : memref<2x1x256xf32, #tpu.memory_space<vmem>>, vector<2x1x256xf32>
    tpu.vector_store %arg3[%c0_3, %c0_4, %c0_5], %4 {strides = array<i32>} : memref<2x1x256xf32, #tpu.memory_space<vmem>>, vector<2x1x256xf32>,
    return
  }
  func.func @transform_0(%arg0: i32, %arg1: i32) -> (i32, i32, i32) {
    %c0_i32 = arith.constant 0 : i32
    %c0_i32_0 = arith.constant 0 : i32
    return %arg0, %c0_i32, %arg1 : i32, i32, i32
  }
  func.func @transform_1(%arg0: i32, %arg1: i32) -> (i32, i32, i32) {
    %c0_i32 = arith.constant 0 : i32
    %c0_i32_0 = arith.constant 0 : i32
    return %arg0, %c0_i32, %arg1 : i32, i32, i32
  }
}

</mosaic_0001>

<bundles_post_ra>
// kernel: tpu_custom_call.1
= control target key start
LH: loop header
LB: loop body
LE: loop exit
PB: predicated region body
PF: predicated region fallthrough
CT: control target
= control target key end

     0   :  { %6 = vsyncpa [#allocation3], 0  ;;  %s221_s0 = inlined_call_operand.hbm [shape: f32[2,4,256], index: 0, kind: input, shape index: {}]   ;;  %s222_s1 = inlined_call_operand.hbm [shape: f32[2,1,256], index: 1, kind: output, shape index: {}]  }
   0x1   :  { %7 = vsyncpa [#allocation4], 0  ;;  %s180_s6 = smov [#allocation2]   ;;  %s132_s10 = scalar_lea.hbm %s221_s0, 256 }
   0x2   :  { %s13_s7 = sshll.u32 %s180_s6, 4  ;;  %p133_p0 = scmp.ne.s32.totalorder %s221_s0, %s132_s10  ;;  %s14_s7 = int_to_ptr.vmem [resolvable:$true] %s13_s7 }
   0x3   :  { %p136_p1 = scmp.lt.u32.totalorder %s132_s10, %s221_s0 }
   0x5   :  { %p138_p2 = pnand %p136_p1, %p133_p0 }
   0x7   :  { %141 = shalt.err (!%p138_p2)
}
   0x8   :  { %s142_s15 = scalar_lea.vmem %s14_s7, 256  ;;  %p147_p4 = scmp.lt.s32.totalorder %s14_s7, %s14_s7 }
   0x9   :  { %p143_p3 = scmp.ne.s32.totalorder %s14_s7, %s142_s15  ;;  %p148_p5 = scmp.lt.s32.totalorder %s142_s15, %s142_s15 }
   0xb   :  { %p149_p6 = por %p148_p5, %p147_p4 }
   0xd   :  { %p150_p7 = pnand %p149_p6, %p143_p3 }
   0xf   :  { %153 = shalt.err (!%p150_p7)
}
  0x10   :  { %s181_s16 = smov 128   ;;  %s182_s17 = smov 8  }
  0x11   :  { %19 = dma.hbm_to_vmem [thread:$0]  %s221_s0, 256, %s14_s7, [#allocation3], %s181_s16, %s181_s16, %s182_s17  }
  0x12   :  { %176 = dma.done.wait [#allocation3], 256  }
  0x13   :  { %177 = vsyncadd [#allocation3], 4294967040  ;;  %vm31_vm0 = vcmask 1043456   ;;  %v23_v0 = vld [vmem:[#allocation2] sm:$0xff]  ;;  %v24_v1 = vld [vmem:[#allocation2 + $0x8] sm:$0xff]  ;;  %v72_v20 = vlaneseq  ;;  %s184_s0 = smov [#allocation5]  }
  0x14   :  { %v27_v2 = vcombine.high %v23_v0, %v23_v0  ;;  %v32_v3 = vsel %vm31_vm0, %v23_v0, 0.0  ;;  %v28_v4 = vcombine.high %v24_v1, %v24_v1  ;;  %v46_v5 = vsel %vm31_vm0, %v24_v1, 0.0  ;;  %s111_s20 = sshll.u32 %s184_s0, 4  ;;  %s112_s20 = int_to_ptr.vmem [resolvable:$true] %s111_s20 }
  0x15   :  { %v33_v6 = vrot.slane %v32_v3, 4  ;;  %v47_v7 = vrot.slane %v46_v5, 4  ;;  %v183_v18 = vmov 1966171168   ;;  %v73_v30 = vshrl.u32 %v72_v20, 7  ;;  %s154_s21 = scalar_lea.vmem %s112_s20, 64  ;;  %p159_p9 = scmp.lt.s32.totalorder %s112_s20, %s112_s20 }
  0x16   :  { %v39_v8 = vsel %vm31_vm0, %v27_v2, 0.0  ;;  %v53_v9 = vsel %vm31_vm0, %v28_v4, 0.0  ;;  %v70_v19 = vunpack.c.l.s4 %v183_v18  ;;  %vm102_vm1 = vcmp.lt.s32.totalorder %v72_v20, 256  ;;  %p155_p8 = scmp.ne.s32.totalorder %s112_s20, %s154_s21  ;;  %p160_p10 = scmp.lt.s32.totalorder %s154_s21, %s154_s21 }
  0x17   :  { %v34_v10 = vadd.f32 %v33_v6, %v32_v3  ;;  %v40_v11 = vrot.slane %v39_v8, 4  ;;  %v48_v12 = vadd.f32 %v47_v7, %v46_v5  ;;  %v54_v13 = vrot.slane %v53_v9, 4 }
  0x18   :  { %v71_v29 = vunpack.c.0.s8 %v70_v19  ;;  %p161_p11 = por %p160_p10, %p159_p9 }
  0x19   :  { %v35_v14 = vrot.slane %v34_v10, 2  ;;  %v41_v15 = vadd.f32 %v40_v11, %v39_v8  ;;  %v49_v16 = vrot.slane %v48_v12, 2  ;;  %v55_v17 = vadd.f32 %v54_v13, %v53_v9 }
  0x1a   :  { %v74_v40 = vsub.s32 %v71_v29, %v73_v30  ;;  %p162_p12 = pnand %p161_p11, %p155_p8 }
  0x1b   :  { %v36_v21 = vadd.f32 %v35_v14, %v34_v10  ;;  %v42_v22 = vrot.slane %v41_v15, 2  ;;  %v50_v23 = vadd.f32 %v49_v16, %v48_v12  ;;  %v56_v24 = vrot.slane %v55_v17, 2 }
  0x1d   :  { %v37_v25 = vrot.slane %v36_v21, 1  ;;  %v43_v26 = vadd.f32 %v42_v22, %v41_v15  ;;  %v51_v27 = vrot.slane %v50_v23, 1  ;;  %v57_v28 = vadd.f32 %v56_v24, %v55_v17 }
  0x1f   :  { %v38_v31 = vadd.f32 %v37_v25, %v36_v21  ;;  %v44_v32 = vrot.slane %v43_v26, 1  ;;  %v52_v33 = vadd.f32 %v51_v27, %v50_v23  ;;  %v58_v34 = vrot.slane %v57_v28, 1 }
  0x21   :  { %v45_v35 = vadd.f32 %v44_v32, %v43_v26  ;;  %v60_v36 = vmul.f32 0.25, %v38_v31  ;;  %v59_v37 = vadd.f32 %v58_v34, %v57_v28  ;;  %v62_v38 = vmul.f32 0.25, %v52_v33 }
  0x23   :  { %v61_v39 = vmul.f32 0.25, %v45_v35  ;;  %v63_v41 = vmul.f32 0.25, %v59_v37 }
  0x25   :  { %v68_v42 = vcombine.low %v60_v36, %v61_v39  ;;  %v83_v43 = vcombine.low %v62_v38, %v63_v41 }
  0x27   :  { %v75_v44 = vrot.slane %v68_v42, %v74_v40  ;;  %v90_v45 = vrot.slane %v83_v43, %v74_v40 }
  0x29   :  { %v82_v46 = vrot.slane %v75_v44, %v74_v40  ;;  %v97_v47 = vrot.slane %v90_v45, %v74_v40 }
  0x2b   :  { %104 = vst.msk [vmem:[#allocation5] sm:$0x3] %vm102_vm1, %v82_v46  ;;  %105 = vst.msk [vmem:[#allocation5 + $0x2] sm:$0x3] %vm102_vm1, %v97_v47 }
  0x2c   :  { %165 = shalt.err (!%p162_p12)
}
  0x2d   :  { %s166_s24 = scalar_lea.hbm %s222_s1, 64 }
  0x2e   :  { %p167_p13 = scmp.ne.s32.totalorder %s222_s1, %s166_s24  ;;  %p170_p0 = scmp.lt.u32.totalorder %s166_s24, %s222_s1 }
  0x30   :  { %p172_p1 = pnand %p170_p0, %p167_p13 }
  0x32   :  { %175 = shalt.err (!%p172_p1)
}
  0x33   :  { %s185_s29 = smov 32   ;;  %s186_s30 = smov 2  }
  0x34   :  { %117 = dma.vmem_to_hbm [thread:$0]  %s112_s20, 64, %s222_s1, [#allocation4], %s185_s29, %s185_s29, %s186_s30  }
  0x35   :  { %178 = dma.done.wait [#allocation4], 64  }
  0x36   :  { %179 = vsyncadd [#allocation4], 4294967232 }
  0x37   :  { %121 = vsyncpa [#allocation3], 1 }
  0x38   :  { %122 = vsyncpa [#allocation4], 1 }

</bundles_post_ra>
